<compile_context>
chip_gen: v6e
topology: v6e:2x2x1
jax: 0.10.0
libtpu: 0.0.40
codegen_flags: <defaults>
</compile_context>

<pallas_src>
import functools

import numpy as np

import jax
import jax.numpy as jnp
from jax.experimental import pallas as pl
from jax.experimental.pallas import tpu as pltpu


# --------------------------------------------------------------------------------------
# Helpers
# --------------------------------------------------------------------------------------

def _compute_pad(t, kernel_shape, stride):
    # Mirrors Unit1D.compute_pad exactly.
    if t % stride == 0:
        return max(kernel_shape - stride, 0)
    return max(kernel_shape - t % stride, 0)


def _cdiv(a, b):
    return -(-a // b)


def _round_up(x, m):
    return ((x + m - 1) // m) * m


def _vmem_budget():
    """Returns (live-buffer budget, vmem_limit_bytes).

    Conservative on v7x (64 MiB physical VMEM), roomier on v5e/v6e (128 MiB)."""
    cap = None
    try:
        cap = getattr(pltpu.get_tpu_info(), "vmem_capacity_bytes", None)
    except Exception:  # pragma: no cover - best-effort query only
        cap = None
    if cap is not None and cap >= 100 * 1024 * 1024:     # v5e / v6e
        return 40 * 1024 * 1024, 96 * 1024 * 1024
    return 18 * 1024 * 1024, 48 * 1024 * 1024            # v7x / unknown


def _pick_time_tile(B, T, T_out, Cin, Cout, K, S, itemsize, budget):
    """Returns None for the single-block path, else a lane-dense output tile (mult of 128).

    Estimates include the in-kernel intermediates (window concat, per-tap slice, f32
    accumulator), not just the pipeline buffers."""
    Lp = (T_out - 1) * S + K
    est_single = itemsize * (2 * Cin * T + 2 * Cout * T_out + Cin * Lp
                             + Cin * ((T_out - 1) * S + 1) + K * Cout * Cin) \
        + 8 * Cout * T_out
    # Prefer the single-block path for short sequences; prefer the tiled path when the
    # sequence is long enough to split across cores (especially when B is small).
    single_ok = est_single <= budget and (T_out <= 1024 or (B >= 2 and T_out <= 2048))
    if single_ok:
        return None

    def est(tm):
        tmS = tm * S
        return itemsize * (2 * Cin * tmS + 2 * Cout * tm + Cin * (tmS + K)
                           + Cin * ((tm - 1) * S + 1) + K * Cout * Cin) \
            + 8 * Cout * tm

    tm = 4096
    while tm > 128 and est(tm) > budget:
        tm //= 2
    # Balance block sizes so the last block is not mostly padding.
    nT = _cdiv(T_out, tm)
    tm = min(tm, _round_up(_cdiv(T_out, nT), 128))
    return max(tm, 128)


# --------------------------------------------------------------------------------------
# Kernels
# --------------------------------------------------------------------------------------

def _tap_matmul(xs, w_ref, b_ref, K, S, Cin, Cout, n_out, apply_relu, out_dtype):
    """sum_k W[k] @ shift_k(xs) with f32 accumulation, then bias + ReLU."""
    acc = jnp.zeros((Cout, n_out), jnp.float32)
    for k in range(K):
        if S == 1:
            xk = xs[:, k:k + n_out]
        else:
            # TODO(synk): polyphase-decompose stride>1 in the wrapper so this stays a
            # contiguous lane slice instead of a strided one.
            xk = jax.lax.slice(xs, (0, k), (Cin, k + (n_out - 1) * S + 1), (1, S))
        acc = acc + jnp.dot(w_ref[k], xk, preferred_element_type=jnp.float32)
    y = acc + b_ref[...]
    if apply_relu:
        y = jnp.maximum(y, 0.0)
    return y.astype(out_dtype)


def _make_single_kernel(K, Cin, Cout, T, T_out, S, pad_f, apply_relu):
    """One time-block per batch element; grid=(B,), auto-pipelined across batch."""
    Lp = (T_out - 1) * S + K           # padded window length actually consumed
    use_cols = min(T, Lp - pad_f)      # columns of x that are read
    tail = Lp - pad_f - use_cols       # right zero-pad columns

    def kernel(x_ref, w_ref, b_ref, o_ref):
        x = x_ref[...]                 # (Cin, T)
        if use_cols < T:
            x = x[:, :use_cols]
        parts = []
        if pad_f > 0:
            parts.append(jnp.zeros((Cin, pad_f), x.dtype))
        parts.append(x)
        if tail > 0:
            parts.append(jnp.zeros((Cin, tail), x.dtype))
        xs = jnp.concatenate(parts, axis=1) if len(parts) > 1 else parts[0]
        o_ref[...] = _tap_matmul(xs, w_ref, b_ref, K, S, Cin, Cout, T_out,
                                 apply_relu, o_ref.dtype)

    return kernel


def _make_tiled_kernel(K, Cin, Cout, T, S, tm, h_l, h_r, mask_tail, apply_relu):
    """Tiled path: grid=(B, nT); aligned (Cin, tm*S) input blocks + tiny halo input."""
    tmS = tm * S
    with_halo = (h_l + h_r) > 0

    def compute(j, xb, halo_ref, w_ref, b_ref, o_ref):
        if mask_tail:
            # Zero columns past the true sequence end (the conceptual right pad).
            col = jax.lax.broadcasted_iota(jnp.int32, (Cin, tmS), 1)
            xb = jnp.where(col < (T - j * tmS), xb, jnp.zeros_like(xb))
        if with_halo:
            parts = []
            if h_l > 0:
                parts.append(halo_ref[:, :h_l])
            parts.append(xb)
            if h_r > 0:
                parts.append(halo_ref[:, h_l:h_l + h_r])
            xs = jnp.concatenate(parts, axis=1)    # (Cin, h_l + tm*S + h_r)
        else:
            xs = xb
        o_ref[...] = _tap_matmul(xs, w_ref, b_ref, K, S, Cin, Cout, tm,
                                 apply_relu, o_ref.dtype)

    if with_halo:
        def kernel(x_ref, halo_ref, w_ref, b_ref, o_ref):
            compute(pl.program_id(1), x_ref[...], halo_ref, w_ref, b_ref, o_ref)
    else:
        def kernel(x_ref, w_ref, b_ref, o_ref):
            compute(pl.program_id(1), x_ref[...], None, w_ref, b_ref, o_ref)
    return kernel


# --------------------------------------------------------------------------------------
# Forward wrapper
# --------------------------------------------------------------------------------------

def unit1d_forward(x, weight, bias=None, *, kernel_shape=1, stride=1,
                   padding="same", activation="relu", _force_tile=None):
    """Pallas forward pass of Unit1D.

    x:      (B, Cin, T)     -- PyTorch NCT layout, kept end-to-end (no transposes)
    weight: (Cout, Cin, K)  -- PyTorch Conv1d weight layout
    bias:   (Cout,) or None
    returns (B, Cout, T_out) in x.dtype
    """
    B, Cin, T = x.shape
    Cout = weight.shape[0]
    K, S = kernel_shape, stride
    assert weight.shape == (Cout, Cin, K)

    if padding == "same":
        pad_t = _compute_pad(T, K, S)
        pad_f = pad_t // 2
        T_out = (T + pad_t - K) // S + 1
    else:
        pad_f = 0
        T_out = (T - K) // S + 1
    assert T_out >= 1, "degenerate output length"

    dtype = x.dtype
    apply_relu = activation == "relu"
    itemsize = jnp.dtype(dtype).itemsize
    budget, vmem_limit = _vmem_budget()

    # Weight -> (K, Cout, Cin) so tap k is a clean (Cout,Cin) x (Cin,tm) matmul.
    w = jnp.transpose(weight, (2, 0, 1)).astype(dtype)
    if bias is None:
        b2 = jnp.zeros((Cout, 1), jnp.float32)
    else:
        b2 = bias.astype(jnp.float32).reshape(Cout, 1)

    if _force_tile is not None:
        tm = _round_up(int(_force_tile), 128)
    else:
        tm = _pick_time_tile(B, T, T_out, Cin, Cout, K, S, itemsize, budget)

    # ---------------- single-block path (short sequences) ----------------
    if tm is None:
        kernel = _make_single_kernel(K, Cin, Cout, T, T_out, S, pad_f, apply_relu)
        return pl.pallas_call(
            kernel,
            grid=(B,),
            in_specs=[
                pl.BlockSpec((None, Cin, T), lambda b: (b, 0, 0)),
                pl.BlockSpec((K, Cout, Cin), lambda b: (0, 0, 0)),
                pl.BlockSpec((Cout, 1), lambda b: (0, 0)),
            ],
            out_specs=pl.BlockSpec((None, Cout, T_out), lambda b: (b, 0, 0)),
            out_shape=jax.ShapeDtypeStruct((B, Cout, T_out), dtype),
            compiler_params=pltpu.CompilerParams(
                dimension_semantics=("parallel",),
                vmem_limit_bytes=vmem_limit,
            ),
        )(x, w, b2)

    # ---------------- tiled path (long sequences) ----------------
    tmS = tm * S
    nT = _cdiv(T_out, tm)
    h_l = pad_f                              # left halo columns per block
    h_r = max(0, K - S - pad_f)              # right halo columns per block
    h = h_l + h_r
    mask_tail = nT * tmS > T                 # some block overruns the true input length

    inputs = [x]
    in_specs = [pl.BlockSpec((None, Cin, tmS), lambda b, j: (b, 0, j))]

    if h > 0:
        # Tiny per-block halo (<= K-1 columns per block): gathered once in the wrapper,
        # zeroed where it falls outside [0, T).  Negligible HBM traffic.
        rel = np.concatenate([np.arange(-h_l, 0), tmS + np.arange(h_r)]).astype(np.int64)
        abs_idx = np.arange(nT)[:, None] * tmS + rel[None, :]            # (nT, h)
        valid = (abs_idx >= 0) & (abs_idx < T)
        gather_idx = jnp.asarray(np.clip(abs_idx, 0, T - 1).reshape(-1).astype(np.int32))
        halo = jnp.take(x, gather_idx, axis=2).reshape(B, Cin, nT, h)
        halo = halo * jnp.asarray(valid, dtype).reshape(1, 1, nT, h)
        halo = jnp.transpose(halo, (0, 2, 1, 3))                         # (B, nT, Cin, h)
        inputs.append(halo)
        in_specs.append(pl.BlockSpec((None, None, Cin, h), lambda b, j: (b, j, 0, 0)))

    inputs += [w, b2]
    in_specs += [
        pl.BlockSpec((K, Cout, Cin), lambda b, j: (0, 0, 0)),
        pl.BlockSpec((Cout, 1), lambda b, j: (0, 0)),
    ]

    kernel = _make_tiled_kernel(K, Cin, Cout, T, S, tm, h_l, h_r, mask_tail, apply_relu)

    return pl.pallas_call(
        kernel,
        grid=(B, nT),
        in_specs=in_specs,
        out_specs=pl.BlockSpec((None, Cout, tm), lambda b, j: (b, 0, j)),
        out_shape=jax.ShapeDtypeStruct((B, Cout, T_out), dtype),
        compiler_params=pltpu.CompilerParams(
            # Both axes are independent: batch AND time blocks shard across the v7x
            # TensorCores (keeps both cores busy even when B == 1).
            dimension_semantics=("parallel", "parallel"),
            vmem_limit_bytes=vmem_limit,
        ),
    )(*inputs)


# --------------------------------------------------------------------------------------
# Pure-JAX reference (mirrors the PyTorch module exactly)
# --------------------------------------------------------------------------------------

def unit1d_reference(x, weight, bias, *, kernel_shape, stride, padding, activation):
    T = x.shape[2]
    if padding == "same":
        pad_t = _compute_pad(T, kernel_shape, stride)
        pad_f = pad_t // 2
        pad_b = pad_t - pad_f
        x = jnp.pad(x, ((0, 0), (0, 0), (pad_f, pad_b)))
    out = jax.lax.conv_general_dilated(
        x, weight, window_strides=(stride,), padding="VALID",
        dimension_numbers=("NCH", "OIH", "NCH"))
    out = out + bias[None, :, None]
    if activation == "relu":
        out = jnp.maximum(out, 0.0)
    return out


# --------------------------------------------------------------------------------------
# Demo / self-test
# --------------------------------------------------------------------------------------

if __name__ == "__main__":
    # Shapes consistent with Unit1D: batch=2, in_channels=4, time=16,
    # output_channels=8, kernel_shape=3, stride=1, padding='same', ReLU.
    B, Cin, T = 2, 4, 16
    Cout, K, S = 8, 3, 1

    key = jax.random.PRNGKey(0)
    kx, kw, kb, kx2 = jax.random.split(key, 4)

    x = jax.random.normal(kx, (B, Cin, T), dtype=jnp.float32)
    bound = 1.0 / (Cin * K) ** 0.5
    weight = jax.random.uniform(kw, (Cout, Cin, K), jnp.float32, -bound, bound)
    bias = jax.random.uniform(kb, (Cout,), jnp.float32, -bound, bound)

    # 1) Short-sequence (single-block) path.
    fwd = jax.jit(functools.partial(unit1d_forward, kernel_shape=K, stride=S,
                                    padding="same", activation="relu"))
    out = jax.block_until_ready(fwd(x, weight, bias))
    ref = unit1d_reference(x, weight, bias, kernel_shape=K, stride=S,
                           padding="same", activation="relu")
    assert out.shape == ref.shape == (B, Cout, T)
    assert jnp.allclose(out, ref, atol=1e-4, rtol=1e-4), "mismatch (single-block path)"

    # 2) Tiled (multi time-block) path on a slightly longer sequence, forced tile=128
    #    so the halo + partial-last-block logic is exercised at small scale.
    T2 = 300
    x2 = jax.random.normal(kx2, (B, Cin, T2), dtype=jnp.float32)
    fwd_tiled = jax.jit(functools.partial(unit1d_forward, kernel_shape=K, stride=S,
                                          padding="same", activation="relu",
                                          _force_tile=128))
    out2 = jax.block_until_ready(fwd_tiled(x2, weight, bias))
    ref2 = unit1d_reference(x2, weight, bias, kernel_shape=K, stride=S,
                            padding="same", activation="relu")
    assert out2.shape == ref2.shape == (B, Cout, T2)
    assert jnp.allclose(out2, ref2, atol=1e-4, rtol=1e-4), "mismatch (tiled path)"

    print("KERNEL_OK")
</pallas_src>

<mosaic_0001>
module attributes {stable_mosaic.version = 11 : i64} {
  func.func @kernel(%arg0: i32, %arg1: memref<1x4x16xf32, #tpu.memory_space<vmem>>, %arg2: memref<3x8x4xf32, #tpu.memory_space<vmem>>, %arg3: memref<8x1xf32, #tpu.memory_space<vmem>>, %arg4: memref<1x8x16xf32, #tpu.memory_space<vmem>>) attributes {dimension_semantics = [#tpu.dimension_semantics<parallel>], iteration_bounds = array<i64: 2>, scalar_prefetch = 0 : i64, scratch_operands = 0 : i64, tpu.core_type = #tpu.core_type<tc>, window_params = [{transform_indices = @transform_0, window_bounds = array<i64: 1, 4, 16>}, {pipeline_mode = #tpu.pipeline_mode<synchronous>, transform_indices = @transform_1, window_bounds = array<i64: 3, 8, 4>}, {pipeline_mode = #tpu.pipeline_mode<synchronous>, transform_indices = @transform_2, window_bounds = array<i64: 8, 1>}, {transform_indices = @transform_3, window_bounds = array<i64: 1, 8, 16>}]} {
    %c0 = arith.constant 0 : index
    %c0_0 = arith.constant 0 : index
    %c0_1 = arith.constant 0 : index
    %0 = vector.load %arg1[%c0, %c0_0, %c0_1] : memref<1x4x16xf32, #tpu.memory_space<vmem>>, vector<1x4x16xf32>
    %1 = vector.shape_cast %0 : vector<1x4x16xf32> to vector<4x16xf32>
    %cst = arith.constant 0.000000e+00 : f32
    %2 = vector.broadcast %cst : f32 to vector<4x1xf32>
    %cst_2 = arith.constant 0.000000e+00 : f32
    %3 = vector.broadcast %cst_2 : f32 to vector<4x1xf32>
    %4 = tpu.concatenate %2, %1, %3 in 1 : vector<4x1xf32>, vector<4x16xf32>, vector<4x1xf32> -> vector<4x18xf32>
    %cst_3 = arith.constant 0.000000e+00 : f32
    %5 = vector.broadcast %cst_3 : f32 to vector<8x16xf32>
    %6 = vector.extract_strided_slice %4 {offsets = [0, 0], sizes = [4, 16], strides = [1, 1]} : vector<4x18xf32> to vector<4x16xf32>
    %c0_4 = arith.constant 0 : index
    %c0_5 = arith.constant 0 : index
    %c0_6 = arith.constant 0 : index
    %7 = vector.load %arg2[%c0_4, %c0_5, %c0_6] : memref<3x8x4xf32, #tpu.memory_space<vmem>>, vector<1x8x4xf32>
    %8 = vector.shape_cast %7 : vector<1x8x4xf32> to vector<8x4xf32>
    %cst_7 = arith.constant dense<0.000000e+00> : vector<8x16xf32>
    %9 = tpu.matmul %8, %6, %cst_7 {dimension_numbers = #tpu.dot_dimension_numbers<[1], [0], [0], [1], [0, 0, 1, 1], [], []>} : vector<8x4xf32>, vector<4x16xf32>, vector<8x16xf32> -> vector<8x16xf32>
    %10 = arith.addf %5, %9 : vector<8x16xf32>
    %11 = vector.extract_strided_slice %4 {offsets = [0, 1], sizes = [4, 16], strides = [1, 1]} : vector<4x18xf32> to vector<4x16xf32>
    %c1 = arith.constant 1 : index
    %c0_8 = arith.constant 0 : index
    %c0_9 = arith.constant 0 : index
    %12 = vector.load %arg2[%c1, %c0_8, %c0_9] : memref<3x8x4xf32, #tpu.memory_space<vmem>>, vector<1x8x4xf32>
    %13 = vector.shape_cast %12 : vector<1x8x4xf32> to vector<8x4xf32>
    %cst_10 = arith.constant dense<0.000000e+00> : vector<8x16xf32>
    %14 = tpu.matmul %13, %11, %cst_10 {dimension_numbers = #tpu.dot_dimension_numbers<[1], [0], [0], [1], [0, 0, 1, 1], [], []>} : vector<8x4xf32>, vector<4x16xf32>, vector<8x16xf32> -> vector<8x16xf32>
    %15 = arith.addf %10, %14 : vector<8x16xf32>
    %16 = vector.extract_strided_slice %4 {offsets = [0, 2], sizes = [4, 16], strides = [1, 1]} : vector<4x18xf32> to vector<4x16xf32>
    %c2 = arith.constant 2 : index
    %c0_11 = arith.constant 0 : index
    %c0_12 = arith.constant 0 : index
    %17 = vector.load %arg2[%c2, %c0_11, %c0_12] : memref<3x8x4xf32, #tpu.memory_space<vmem>>, vector<1x8x4xf32>
    %18 = vector.shape_cast %17 : vector<1x8x4xf32> to vector<8x4xf32>
    %cst_13 = arith.constant dense<0.000000e+00> : vector<8x16xf32>
    %19 = tpu.matmul %18, %16, %cst_13 {dimension_numbers = #tpu.dot_dimension_numbers<[1], [0], [0], [1], [0, 0, 1, 1], [], []>} : vector<8x4xf32>, vector<4x16xf32>, vector<8x16xf32> -> vector<8x16xf32>
    %20 = arith.addf %15, %19 : vector<8x16xf32>
    %c0_14 = arith.constant 0 : index
    %c0_15 = arith.constant 0 : index
    %21 = vector.load %arg3[%c0_14, %c0_15] : memref<8x1xf32, #tpu.memory_space<vmem>>, vector<8x1xf32>
    %22 = vector.broadcast %21 : vector<8x1xf32> to vector<8x16xf32>
    %23 = arith.addf %20, %22 : vector<8x16xf32>
    %cst_16 = arith.constant 0.000000e+00 : f32
    %24 = vector.broadcast %cst_16 : f32 to vector<8x16xf32>
    %25 = arith.maximumf %23, %24 : vector<8x16xf32>
    %c0_17 = arith.constant 0 : index
    %c0_18 = arith.constant 0 : index
    %c0_19 = arith.constant 0 : index
    %26 = vector.load %arg4[%c0_17, %c0_18, %c0_19] : memref<1x8x16xf32, #tpu.memory_space<vmem>>, vector<1x8x16xf32>
    %27 = vector.shape_cast %26 : vector<1x8x16xf32> to vector<8x16xf32>
    %28 = vector.shape_cast %25 : vector<8x16xf32> to vector<1x8x16xf32>
    tpu.vector_store %arg4[%c0_17, %c0_18, %c0_19], %28 {strides = array<i32>} : memref<1x8x16xf32, #tpu.memory_space<vmem>>, vector<1x8x16xf32>,
    return
  }
  func.func @transform_0(%arg0: i32) -> (i32, i32, i32) {
    %c0_i32 = arith.constant 0 : i32
    %c0_i32_0 = arith.constant 0 : i32
    %c0_i32_1 = arith.constant 0 : i32
    return %arg0, %c0_i32, %c0_i32_0 : i32, i32, i32
  }
  func.func @transform_1(%arg0: i32) -> (i32, i32, i32) {
    %c0_i32 = arith.constant 0 : i32
    %c0_i32_0 = arith.constant 0 : i32
    %c0_i32_1 = arith.constant 0 : i32
    %c0_i32_2 = arith.constant 0 : i32
    return %c0_i32, %c0_i32_0, %c0_i32_1 : i32, i32, i32
  }
  func.func @transform_2(%arg0: i32) -> (i32, i32) {
    %c0_i32 = arith.constant 0 : i32
    %c0_i32_0 = arith.constant 0 : i32
    %c0_i32_1 = arith.constant 0 : i32
    return %c0_i32, %c0_i32_0 : i32, i32
  }
  func.func @transform_3(%arg0: i32) -> (i32, i32, i32) {
    %c0_i32 = arith.constant 0 : i32
    %c0_i32_0 = arith.constant 0 : i32
    %c0_i32_1 = arith.constant 0 : i32
    return %arg0, %c0_i32, %c0_i32_0 : i32, i32, i32
  }
}

</mosaic_0001>

<bundles_post_ra>
// kernel: unit1d_forward.1
= control target key start
LH: loop header
LB: loop body
LE: loop exit
PB: predicated region body
PF: predicated region fallthrough
CT: control target
= control target key end

     0   :  { %8 = vsyncpa [#allocation3], 0  ;;  %s779_s0 = inlined_call_operand.vmem [shape: f32[2,4,16], index: 0, kind: input, shape index: {}]   ;;  %s780_s1 = inlined_call_operand.vmem [shape: f32[3,8,4], index: 1, kind: input, shape index: {}]   ;;  %s781_s2 = inlined_call_operand.vmem [shape: f32[8,1], index: 2, kind: input, shape index: {}]   ;;  %s782_s3 = inlined_call_operand.hbm [shape: f32[2,8,16], index: 3, kind: output, shape index: {}]  }
   0x1   :  { %10 = vsyncpa [#allocation3 + $0x1], 0  ;;  %s671_s12 = smov 0   ;;  %s673_s13 = smov 0  }
   0x2   :  { %s675_s14 = smov 0   ;;  %s677_s15 = smov 0  }
   0x3 LB: > { %s692_s16 = sadd.s32 4294967295, %s642_s15   ;;  %s496_s17 = sadd.s32 4294967294, %s642_s15   ;;  %s642_s15 = sphi %s677_s15, %s788_s15   ;;  %s638_s14 = sphi %s675_s14, %s787_s14   ;;  %s634_s13 = sphi %s673_s13, %s786_s13   ;;  %s630_s12 = sphi %s671_s12, %s785_s12  }
   0x4   : > { %s696_s18 = sadd.s32 1, %s642_s15   ;;  %s91_s19 = sadd.s32 1, %s638_s14 }
   0x5   : > { %s88_s20 = ssub.s32 %s642_s15, %s696_s18  ;;  %p101_p0 = scmp.ne.s32.totalorder %s638_s14, %s634_s13 }
   0x6   : > { %p89_p1 = scmp.eq.s32.totalorder %s88_s20, 0  ;;  %p102_p2 = scmp.eq.s32.totalorder %s692_s16, 1 }
   0x7   : > { %p107_p3 = scmp.ne.s32.totalorder %s634_s13, %s630_s12  ;;  %p108_p4 = scmp.eq.s32.totalorder %s496_s17, 1 }
   0x8   : > { %s707_s21 = scalar_select %p89_p1, %s638_s14, %s91_s19  }
   0x9   : > { %p709_p5 = por %p102_p2, %p101_p0  ;;  %p713_p6 = por %p108_p4, %p107_p3 }
   0xa   : > { %p499_p7 = scmp.ge.s32.totalorder %s642_s15, 1  ;;  %p139_p8 = scmp.lt.s32.totalorder %s642_s15, 3 }
   0xc   : > { %p140_p9 = pnand %p499_p7, %p139_p8 }
   0xd   : > { %p162_p10 = scmp.lt.s32.totalorder (!%p140_p9), %s692_s16, 1  ;;  %s645_s29 = smov (!%p140_p9), 1  }
   0xe   : > { %143 = sbr.rel (%p140_p9) target bundleno = 473 (0x1d9), region = 32  ;;  %s648_s5 = smov (!%p140_p9), 126  }
   0xf   : > { %s649_s6 = smov (!%p140_p9), 127   ;;  %s159_s19 = sand.u32 (!%p140_p9), 1, %s634_s13  }
  0x10   : > { %s500_s20 = sshll.u32 (!%p140_p9), %s159_s19, 3  ;;  %s424_s30 = scalar_lea.sflag (!%p140_p9), [#allocation3], %s159_s19 }
  0x13   : > { %v644_v0 = vmov 0.0   ;;  %s163_s24 = scalar_select %p162_p10, %s692_s16, 1  ;;  %vm646_vm0 = vmmov 0   ;;  %v647_v2 = vmov 0   ;;  %vm171_vm1 = vcmask 7168   ;;  %v175_v6 = vld [vmem:[%s780_s1] sm:$0xff] }
  0x14   : > { %525 = vmatprep.subr.mxu1 %v644_v0  ;;  %520 = vmatprep.subr.mxu0 %v644_v0  ;;  %vm173_vm2 = vcmask 138240   ;;  %vm185_vm3 = vcmask 1043456   ;;  %vm181_vm4 = vcmask 31744   ;;  %v413_v7 = vld [vmem:[%s781_s2] sm:$0xff]  ;;  %v502_v8 = vld [vmem:[%s780_s1 + $0x8] sm:$0xff]  ;;  %v507_v11 = vld [vmem:[%s780_s1 + $0x10] sm:$0xff] }
  0x15   : > { %s501_s25 = sshll.u32 %s163_s24, 2  ;;  %522 = vmatprep.mubr.msk.f32.mxu0 %vm646_vm0, %v644_v0  ;;  %527 = vmatprep.mubr.msk.f32.mxu1 %vm646_vm0, %v644_v0  ;;  %s511_s24 = sshll.u32 %s692_s16, 7  ;;  %vm421_vm5 = vcmask 130048  }
  0x16   : > { %s165_s28 = scalar_lea.vmem %s779_s0, %s501_s25  ;;  %580 = vset.pattern.permute.xlu1 %v647_v2  ;;  %581 = vset.pattern.permute.xlu0 %v647_v2  ;;  %s161_s25 = scalar_lea.vmem [#allocation2], %s500_s20 }
  0x17   : > { %v166_v1 = vld [vmem:[%s165_s28] sm:$0xf]  ;;  %s437_s26 = sshll.u32 %s161_s25, 4  ;;  %s438_s26 = int_to_ptr.vmem [resolvable:$true] %s437_s26 }
  0x18   : > { %168 = vrot.lane.b32.xlu0 %v166_v1, %s645_s29  ;;  %s435_s29 = scalar_lea.hbm %s782_s3, %s511_s24  ;;  %s582_s4 = scalar_lea.vmem %s438_s26, 128 }
  0x19   : > { %p583_p11 = scmp.ne.s32.totalorder %s438_s26, %s582_s4 }
  0x1b   : > { %p584_p12 = pnand %p583_p11, %p709_p5 }
  0x1d   : > { %p585_p13 = pneg %p584_p12 }
  0x8a   : > { %v169_v3 = vpop.permute.xlu0 %168 }
  0x8b   : > { %v172_v4 = vsel %vm171_vm1, 0.0, %v169_v3 }
  0x8c   : > { %v174_v5 = vsel %vm173_vm2, %v172_v4, 0.0 }
  0x8d   : > { %335 = vrot.lane.b32.xlu1 %v174_v5, %s648_s5  ;;  %179 = vrot.lane.b32.xlu0 %v174_v5, %s649_s6  ;;  %s650_s5 = smov [#allocation2]  }
  0x8e   : > { %526 = vmatpush3.msk.msra.mxu1 %vm185_vm3, %v174_v5  ;;  %s586_s6 = sshll.u32 %s650_s5, 4  ;;  %s587_s6 = int_to_ptr.vmem [resolvable:$false] %s586_s6 }
  0x8f   : > { %528 = vmatmul.mubr.msk.f32.vlgmr.msra.gmra.mxu1 %vm181_vm4, %v175_v6  ;;  %s588_s16 = scalar_lea.vmem %s587_s6, 256  ;;  %p589_p0 = scmp.lt.s32.totalorder %s438_s26, %s587_s6 }
  0x90   : > { %p590_p1 = scmp.lt.s32.totalorder %s588_s16, %s582_s4 }
  0x91   : > { %416 = vperm.xlu1 %580, %v413_v7  }
  0x92   : > { %p591_p2 = por %p590_p1, %p589_p0 }
  0x94   : > { %p592_p3 = pnand %p591_p2, %p585_p13 }
  0xff   : > { %v180_v9 = vpop.permute.xlu0 %179  ;;  %v336_v10 = vpop.permute.xlu1 %335 }
 0x100   : > { %521 = vmatpush3.msk.msra.mxu0 %vm185_vm3, %v180_v9 }
 0x101   : > { %523 = vmatmul.mubr.msk.f32.vlgmr.msra.gmra.mxu0 %vm181_vm4, %v502_v8  ;;  %530 = vmatprep.subr.mxu0 %v644_v0 }
 0x102   : > { %531 = vmatpush3.msk.msra.mxu0 %vm185_vm3, %v336_v10  ;;  %532 = vmatprep.mubr.msk.f32.mxu0 %vm646_vm0, %v644_v0 }
 0x105   : > { %533 = vmatmul.mubr.msk.f32.vlgmr.msra.gmra.mxu0 %vm181_vm4, %v507_v11 }
 0x10c   : > { %v417_v18 = vpop.permute.xlu1 %416 }
 0x14f   : > { %v329_v12 = vpop.f32.mrf.mxu1 }
 0x151   : > { %v529_v13 = vpop.f32.mrf.mxu1 }
 0x1c1   : > { %v254_v14 = vpop.f32.mrf.mxu0 }
 0x1c2   : > { %v330_v16 = vadd.f32 %v329_v12, %v254_v14 }
 0x1c3   : > { %v524_v15 = vpop.f32.mrf.mxu0 }
 0x1c5   : > { %v408_v17 = vpop.f32.mrf.mxu0 }
 0x1c6   : > { %v412_v19 = vadd.f32 %v408_v17, %v330_v16 }
 0x1c7   : > { %v534_v20 = vpop.f32.mrf.mxu0 }
 0x1c8   : > { %v419_v21 = vadd.f32 %v417_v18, %v412_v19 }
 0x1ca   : > { %v420_v22 = vmax.f32 %v419_v21, 0.0 }
 0x1cc   : > { %422 = vst.msk [vmem:[%s161_s25] sm:$0xff] %vm421_vm5, %v420_v22 }
 0x1cd   : > { %595 = shalt.err (!%p592_p3)
}
 0x1ce   : > { %s596_s7 = scalar_lea.hbm %s435_s29, 128  ;;  %s600_s10 = scalar_lea.hbm %s782_s3, 256 }
 0x1cf   : > { %p597_p4 = scmp.ne.s32.totalorder %s435_s29, %s596_s7  ;;  %p601_p9 = scmp.lt.s32.totalorder %s435_s29, %s782_s3 }
 0x1d0   : > { %p602_p10 = scmp.lt.s32.totalorder %s600_s10, %s596_s7 }
 0x1d1   : > { %p598_p7 = pnand %p597_p4, %p709_p5 }
 0x1d2   : > { %p603_p11 = por %p602_p10, %p601_p9 }
 0x1d3   : > { %p599_p8 = pneg %p598_p7 }
 0x1d5   : > { %p604_p12 = pnand %p603_p11, %p599_p8 }
 0x1d7   : > { %607 = shalt.err (!%p604_p12)
}
 0x1d8   : > { %535 = dma.vmem_to_hbm [thread:$0]  (%p709_p5), %s438_s26, 128, %s435_s29, %s424_s30  }
 0x1d9 PF: > { %p541_p13 = scmp.ge.s32.totalorder %s642_s15, 2  ;;  %s449_s19 = sand.u32 1, %s630_s12  }
 0x1da   : > { %s450_s20 = scalar_lea.sflag [#allocation3], %s449_s19 }
 0x1db   : > { %p538_p0 = pnand %p541_p13, %p713_p6 }
 0x1dd   : > { %p539_p1 = pneg %p538_p0 }
 0x1df   : > { %625 = dma.done.wait (%p539_p1), %s450_s20, 128  }
 0x1e0   : > { %627 = vsyncadd (%p539_p1), %s450_s20, 4294967168  ;;  %p13_p2 = scmp.ge.s32.totalorder %s696_s18, 4   ;;  %s785_s12 = smov %s634_s13 }
 0x1e1   : > { %s786_s13 = smov %s638_s14  ;;  %s787_s14 = smov %s707_s21 }
 0x1e2   : > { %s788_s15 = smov %s696_s18  ;;  %15 = sbr.rel (!%p13_p2) target bundleno = 3 (0x3), region = 69 }
 0x1e7   :  { %455 = vsyncpa [#allocation3], 1 }
 0x1e8   :  { %457 = vsyncpa [#allocation3 + $0x1], 1 }

</bundles_post_ra>
